<compile_context>
chip_gen: v5e
topology: v5e:2x2
jax: 0.10.0
libtpu: 0.0.40
codegen_flags: <defaults>
</compile_context>

<pallas_src>
import functools

import jax
import jax.numpy as jnp
from jax import lax
from jax.experimental import pallas as pl
from jax.experimental.pallas import tpu as pltpu


def _attn_kernel(*refs, M, B, Sk, Dout, QPAD, has_dropout):
    if has_dropout:
        x_ref, w_ref, b_ref, mask_ref, o_ref = refs
    else:
        x_ref, w_ref, b_ref, o_ref = refs
        mask_ref = None

    x = x_ref[...]                               # (QPAD + B*Sk, Din)
    # One fused MXU push computes both projections (scale already folded in):
    #   proj[:, :Dout] = x @ (Wq^T / inv_scale) + bq/inv_scale  (query rows used)
    #   proj[:, Dout:] = x @ Wk^T + bk                          (value rows used)
    proj = jnp.dot(x, w_ref[...], preferred_element_type=jnp.float32) + b_ref[...]

    qp = proj[:M, :Dout]                         # scaled q_linear(query)  (M, Dout)
    key_all = proj[QPAD:, Dout:]                 # k_linear(value) for all batches (B*Sk, Dout)

    # One MXU push for all batches' scores: (M, B*Sk); already includes 1/inv_scale.
    s_all = lax.dot_general(qp, key_all, (((1,), (1,)), ((), ())),
                            preferred_element_type=jnp.float32)

    if mask_ref is not None:
        mask_all = mask_ref[...]                 # precomputed (keep >= p) / (1 - p)

    outs = []
    for b in range(B):                           # static unroll (B == 2)
        s = s_all[:, b * Sk:(b + 1) * Sk]        # lane slice, same vreg -> free
        m = jnp.max(s, axis=-1, keepdims=True)
        e = jnp.exp(s - m)
        denom = jnp.sum(e, axis=-1, keepdims=True)
        # EUP approximate reciprocal (frees the VALU slot; ~bf16-level accuracy,
        # more than enough for attention weights).
        sm = e * pl.reciprocal(denom, approx=True)

        if mask_ref is not None:                 # inverted dropout, single vmul
            sm = sm * mask_all[:, b * Sk:(b + 1) * Sk]

        v_b = x[QPAD + b * Sk:QPAD + (b + 1) * Sk, :]   # value[b]  (Sk, Dv), 8-row aligned
        outs.append(jnp.dot(sm, v_b, preferred_element_type=jnp.float32))

    # Single lane-dense store of the stacked output slab.
    o_ref[...] = jnp.concatenate(outs, axis=0).astype(o_ref.dtype)


@functools.partial(jax.jit, static_argnames=("dropout_p",))
def _forward_jit(query, value, wq, bq, wk, bk, inv_scale_factor, seed, *, dropout_p):
    M, Din = query.shape
    B, Sk, Dv = value.shape
    Dout = wq.shape[0]
    QPAD = ((M + 7) // 8) * 8                    # sublane-align the query block

    scale = 1.0 / inv_scale_factor               # fold scaling into the q projection

    # Packed input: rows [0, M) query, [M, QPAD) zero pad, [QPAD, ...) value.
    x_cat = jnp.concatenate(
        [query.astype(jnp.float32),
         jnp.zeros((QPAD - M, Din), jnp.float32),
         value.reshape(B * Sk, Dv).astype(jnp.float32)], axis=0)
    w_cat = jnp.concatenate([wq.T * scale, wk.T], axis=1)          # (Din, 2*Dout)
    b_cat = jnp.concatenate([bq * scale, bk]).reshape(1, 2 * Dout)  # (1, 2*Dout)

    args = [x_cat, w_cat, b_cat]
    in_specs = [pl.BlockSpec(memory_space=pltpu.MemorySpace.VMEM)] * 3

    has_dropout = 0.0 < dropout_p < 1.0
    if has_dropout:
        # TODO(synk): statistically equivalent to torch dropout but does not
        # bit-match torch's RNG stream.
        u = jax.random.uniform(jax.random.PRNGKey(seed), (M, B * Sk), jnp.float32)
        mult = (u >= dropout_p).astype(jnp.float32) * (1.0 / (1.0 - dropout_p))
        args.append(mult)
        in_specs.append(pl.BlockSpec(memory_space=pltpu.MemorySpace.VMEM))

    flops = (2 * (QPAD + B * Sk) * Din * (2 * Dout)   # fused projection
             + 2 * M * Dout * (B * Sk)                # scores
             + B * 2 * M * Sk * Dv)                   # attention @ value
    bytes_accessed = 4 * ((QPAD + B * Sk) * Din + Din * 2 * Dout + 2 * Dout
                          + (M * B * Sk if has_dropout else 0) + B * M * Dv)

    kernel = functools.partial(_attn_kernel, M=M, B=B, Sk=Sk, Dout=Dout,
                               QPAD=QPAD, has_dropout=has_dropout)
    out2d = pl.pallas_call(
        kernel,
        out_shape=jax.ShapeDtypeStruct((B * M, Dv), jnp.float32),
        in_specs=in_specs,
        out_specs=pl.BlockSpec(memory_space=pltpu.MemorySpace.VMEM),
        cost_estimate=pl.CostEstimate(flops=flops,
                                      transcendentals=B * M * (Sk + 1),
                                      bytes_accessed=bytes_accessed),
    )(*args)
    return out2d.reshape(B, M, Dv)


def model_forward(query, value, wq, bq, wk, bk, inv_scale_factor, dropout_p,
                  seed=0):
    M, Din = query.shape
    B, Sk, Dv = value.shape
    Dout = wq.shape[0]
    # Fused-weight layout (and key^T contraction) requires the square 8x8 linears.
    assert Din == Dv == Dout == wq.shape[1] == wk.shape[0] == wk.shape[1]
    # inv_scale_factor == 0 would give inf scores (same as the torch reference).

    p = float(dropout_p)
    if p >= 1.0:
        # F.dropout(softmax, p=1) zeroes the attention weights -> output is
        # exactly zero; no kernel launch needed (XLA constant-folds this).
        return jnp.zeros((B, M, Dv), jnp.float32)

    return _forward_jit(query, value, wq, bq, wk, bk,
                        jnp.float32(inv_scale_factor), seed, dropout_p=p)


def ref_forward_no_dropout(query, value, wq, bq, wk, bk, inv_scale):
    # pure-JAX reference of the forward with dropout_p = 0
    q = query @ wq.T + bq
    k = value @ wk.T + bk
    s = jnp.einsum('md,bkd->bmk', q, k) / inv_scale
    sm = jax.nn.softmax(s, axis=-1)
    return jnp.einsum('bmk,bkd->bmd', sm, value)


if __name__ == "__main__":
    M, Din, B, Sk, Dv = 2, 8, 2, 8, 8

    key0 = jax.random.PRNGKey(0)
    k1, k2, k3, k4, k5, k6 = jax.random.split(key0, 6)
    query = jax.random.normal(k1, (M, Din), jnp.float32)
    value = jax.random.normal(k2, (B, Sk, Dv), jnp.float32)

    bound = 1.0 / (Din ** 0.5)   # PyTorch default Linear init range
    wq = jax.random.uniform(k3, (Din, Din), jnp.float32, -bound, bound)
    bq = jax.random.uniform(k4, (Din,), jnp.float32, -bound, bound)
    wk = jax.random.uniform(k5, (Din, Dv), jnp.float32, -bound, bound)
    bk = jax.random.uniform(k6, (Din,), jnp.float32, -bound, bound)

    inv_scale_factor = 1.0
    dropout_p = 1.0   # as in the reference module (F.dropout with p=1 -> zeros)

    # Module's configuration: dropout_p = 1 -> output must be all zeros.
    out = jax.block_until_ready(
        model_forward(query, value, wq, bq, wk, bk, inv_scale_factor, dropout_p))
    assert out.shape == (B, M, Dv)
    assert jnp.allclose(out, jnp.zeros((B, M, Dv), jnp.float32), atol=1e-6)

    # Sanity-check the attention math itself with dropout disabled (p = 0).
    # Tolerance is loosened slightly because the kernel uses the EUP
    # approximate reciprocal for the softmax denominator.
    out_p0 = jax.block_until_ready(
        model_forward(query, value, wq, bq, wk, bk, inv_scale_factor, 0.0))
    ref_p0 = ref_forward_no_dropout(query, value, wq, bq, wk, bk, inv_scale_factor)
    assert jnp.allclose(out_p0, ref_p0, atol=1e-2, rtol=1e-2)

    # Exercise the 0 < p < 1 dropout path once (shape / finiteness only; the
    # mask stream intentionally differs from torch's RNG).
    out_p05 = jax.block_until_ready(
        model_forward(query, value, wq, bq, wk, bk, inv_scale_factor, 0.5))
    assert out_p05.shape == (B, M, Dv)
    assert bool(jnp.all(jnp.isfinite(out_p05)))

    print("KERNEL_OK")
</pallas_src>

<mosaic_0001>
module attributes {stable_mosaic.version = 11 : i64} {
  func.func @_attn_kernel(%arg0: memref<24x8xf32, #tpu.memory_space<vmem>>, %arg1: memref<8x16xf32, #tpu.memory_space<vmem>>, %arg2: memref<1x16xf32, #tpu.memory_space<vmem>>, %arg3: memref<4x8xf32, #tpu.memory_space<vmem>>) attributes {dimension_semantics = [], scalar_prefetch = 0 : i64, scratch_operands = 0 : i64, tpu.core_type = #tpu.core_type<tc>} {
    %c0 = arith.constant 0 : index
    %c0_0 = arith.constant 0 : index
    %0 = vector.load %arg0[%c0, %c0_0] : memref<24x8xf32, #tpu.memory_space<vmem>>, vector<24x8xf32>
    %c0_1 = arith.constant 0 : index
    %c0_2 = arith.constant 0 : index
    %1 = vector.load %arg1[%c0_1, %c0_2] : memref<8x16xf32, #tpu.memory_space<vmem>>, vector<8x16xf32>
    %cst = arith.constant dense<0.000000e+00> : vector<24x16xf32>
    %2 = tpu.matmul %0, %1, %cst {dimension_numbers = #tpu.dot_dimension_numbers<[1], [0], [0], [1], [0, 0, 1, 1], [], []>} : vector<24x8xf32>, vector<8x16xf32>, vector<24x16xf32> -> vector<24x16xf32>
    %c0_3 = arith.constant 0 : index
    %c0_4 = arith.constant 0 : index
    %3 = vector.load %arg2[%c0_3, %c0_4] : memref<1x16xf32, #tpu.memory_space<vmem>>, vector<1x16xf32>
    %4 = vector.broadcast %3 : vector<1x16xf32> to vector<24x16xf32>
    %5 = arith.addf %2, %4 : vector<24x16xf32>
    %6 = vector.extract_strided_slice %5 {offsets = [0, 0], sizes = [2, 8], strides = [1, 1]} : vector<24x16xf32> to vector<2x8xf32>
    %7 = vector.extract_strided_slice %5 {offsets = [8, 8], sizes = [16, 8], strides = [1, 1]} : vector<24x16xf32> to vector<16x8xf32>
    %cst_5 = arith.constant dense<0.000000e+00> : vector<2x16xf32>
    %8 = tpu.matmul %6, %7, %cst_5 {dimension_numbers = #tpu.dot_dimension_numbers<[1], [1], [0], [0], [0, 0, 1, 0], [], []>} : vector<2x8xf32>, vector<16x8xf32>, vector<2x16xf32> -> vector<2x16xf32>
    %9 = vector.extract_strided_slice %8 {offsets = [0, 0], sizes = [2, 8], strides = [1, 1]} : vector<2x16xf32> to vector<2x8xf32>
    %cst_6 = arith.constant dense<0xFF800000> : vector<2xf32>
    %10 = vector.multi_reduction <maximumf>, %9, %cst_6 [1] : vector<2x8xf32> to vector<2xf32>
    %11 = vector.shape_cast %10 : vector<2xf32> to vector<2x1xf32>
    %12 = vector.broadcast %11 : vector<2x1xf32> to vector<2x8xf32>
    %13 = arith.subf %9, %12 : vector<2x8xf32>
    %14 = math.exp %13 : vector<2x8xf32>
    %cst_7 = arith.constant dense<0.000000e+00> : vector<2xf32>
    %15 = vector.multi_reduction <add>, %14, %cst_7 [1] : vector<2x8xf32> to vector<2xf32>
    %16 = vector.shape_cast %15 : vector<2xf32> to vector<2x1xf32>
    %17 = tpu.reciprocal %16 {approx = true} : vector<2x1xf32> -> vector<2x1xf32>
    %18 = vector.broadcast %17 : vector<2x1xf32> to vector<2x8xf32>
    %19 = arith.mulf %14, %18 : vector<2x8xf32>
    %20 = vector.extract_strided_slice %0 {offsets = [8, 0], sizes = [8, 8], strides = [1, 1]} : vector<24x8xf32> to vector<8x8xf32>
    %cst_8 = arith.constant dense<0.000000e+00> : vector<2x8xf32>
    %21 = tpu.matmul %19, %20, %cst_8 {dimension_numbers = #tpu.dot_dimension_numbers<[1], [0], [0], [1], [0, 0, 1, 1], [], []>} : vector<2x8xf32>, vector<8x8xf32>, vector<2x8xf32> -> vector<2x8xf32>
    %22 = vector.extract_strided_slice %8 {offsets = [0, 8], sizes = [2, 8], strides = [1, 1]} : vector<2x16xf32> to vector<2x8xf32>
    %cst_9 = arith.constant dense<0xFF800000> : vector<2xf32>
    %23 = vector.multi_reduction <maximumf>, %22, %cst_9 [1] : vector<2x8xf32> to vector<2xf32>
    %24 = vector.shape_cast %23 : vector<2xf32> to vector<2x1xf32>
    %25 = vector.broadcast %24 : vector<2x1xf32> to vector<2x8xf32>
    %26 = arith.subf %22, %25 : vector<2x8xf32>
    %27 = math.exp %26 : vector<2x8xf32>
    %cst_10 = arith.constant dense<0.000000e+00> : vector<2xf32>
    %28 = vector.multi_reduction <add>, %27, %cst_10 [1] : vector<2x8xf32> to vector<2xf32>
    %29 = vector.shape_cast %28 : vector<2xf32> to vector<2x1xf32>
    %30 = tpu.reciprocal %29 {approx = true} : vector<2x1xf32> -> vector<2x1xf32>
    %31 = vector.broadcast %30 : vector<2x1xf32> to vector<2x8xf32>
    %32 = arith.mulf %27, %31 : vector<2x8xf32>
    %33 = vector.extract_strided_slice %0 {offsets = [16, 0], sizes = [8, 8], strides = [1, 1]} : vector<24x8xf32> to vector<8x8xf32>
    %cst_11 = arith.constant dense<0.000000e+00> : vector<2x8xf32>
    %34 = tpu.matmul %32, %33, %cst_11 {dimension_numbers = #tpu.dot_dimension_numbers<[1], [0], [0], [1], [0, 0, 1, 1], [], []>} : vector<2x8xf32>, vector<8x8xf32>, vector<2x8xf32> -> vector<2x8xf32>
    %35 = tpu.concatenate %21, %34 in 0 : vector<2x8xf32>, vector<2x8xf32> -> vector<4x8xf32>
    %c0_12 = arith.constant 0 : index
    %c0_13 = arith.constant 0 : index
    %36 = vector.load %arg3[%c0_12, %c0_13] : memref<4x8xf32, #tpu.memory_space<vmem>>, vector<4x8xf32>
    tpu.vector_store %arg3[%c0_12, %c0_13], %35 {strides = array<i32>} : memref<4x8xf32, #tpu.memory_space<vmem>>, vector<4x8xf32>,
    return
  }
}

</mosaic_0001>

<bundles_post_ra>
// kernel: _forward_jit.1
= control target key start
LH: loop header
LB: loop body
LE: loop exit
PB: predicated region body
PF: predicated region fallthrough
CT: control target
= control target key end

     0   :  { %vm23_vm0 = vcmask 64512   ;;  %s292_s0 = inlined_call_operand.vmem [shape: f32[24,8], index: 0, kind: input, shape index: {}]   ;;  %s293_s1 = inlined_call_operand.vmem [shape: f32[8,16], index: 1, kind: input, shape index: {}]   ;;  %s294_s2 = inlined_call_operand.vmem [shape: f32[1,16], index: 2, kind: input, shape index: {}]   ;;  %s295_s3 = inlined_call_operand.hbm [shape: f32[4,8], index: 3, kind: output, shape index: {}]  }
   0x1   :  { %v18_v0 = vld [vmem:[%s293_s1] sm:$0xff]  ;;  %v17_v1 = vld [vmem:[%s292_s0 + $0x10] sm:$0xff]  ;;  %v16_v3 = vld [vmem:[%s292_s0 + $0x8] sm:$0xff] }
   0x2   :  { %v15_v2 = vld [vmem:[%s292_s0] sm:$0xff]  ;;  %199 = vmatpush.msra.mxu2 %v18_v0  ;;  %48 = vmatpush.msra.mxu0 %v18_v0 }
   0x3   :  { %193 = vmatmul.msk.f32.vlgmr.msra.gmra.mxu2 %vm23_vm0, %v17_v1  ;;  %191 = vmatmul.msk.f32.vlgmr.msra.gmra.mxu0 %vm23_vm0, %v15_v2 }
   0x4   :  { %8 = vsyncpa [#allocation3], 0  ;;  %122 = vmatpush.msrb.mxu2 %v16_v3  ;;  %163 = vmatpush.msra.mxu3 %v17_v1  ;;  %v202_v4 = vld [vmem:[%s294_s2] ss:$0 sm:$0xff]  ;;  %s237_s21 = smov 120   ;;  %vm127_vm1 = vcmask 123968  }
   0x5   :  { %vm92_vm2 = vcmask 58368   ;;  %s238_s0 = smov [#allocation2]   ;;  %s182_s24 = sshll.u32 %s295_s3, 4  ;;  %vm171_vm3 = vcmask 1041408   ;;  %vm173_vm4 = vcmask 60416   ;;  %s183_s24 = int_to_ptr.hbm [resolvable:$true] %s182_s24 }
   0x6   :  { %s180_s2 = sshll.u32 %s238_s0, 4  ;;  %s181_s2 = int_to_ptr.vmem [resolvable:$true] %s180_s2 }
   0xb   :  { %192 = vmatmul.msk.f32.gmra.mxu0 %vm23_vm0, %v16_v3 }
  0x80   :  { %v50_v5 = vpop.f32.mrf.mxu0 }
  0x81   :  { %v51_v6 = vadd.f32 %v202_v4, %v50_v5 }
  0x86   :  { %v56_v7 = vpop.f32.mrf.mxu2 }
  0x87   :  { %v57_v8 = vadd.f32 %v202_v4, %v56_v7 }
  0x88   :  { %v53_v9 = vpop.f32.mrf.mxu0 }
  0x89   :  { %63 = vrot.lane.b32.xlu0 %v57_v8, %s237_s21  ;;  %v54_v10 = vadd.f32 %v202_v4, %v53_v9 }
  0x91   :  { %61 = vrot.lane.b32.xlu0 %v54_v10, %s237_s21 }
  0xfb   :  { %v64_v11 = vpop.permute.xlu0 %63 }
  0xfc   :  { %194 = vmatpush.xpose.msk.msra.mxu1 %vm23_vm0, %v64_v11 }
 0x103   :  { %v62_v12 = vpop.permute.xlu0 %61 }
 0x104   :  { %195 = vmatpush.xpose.msk.msra.mxu1 %vm23_vm0, %v62_v12 }
 0x107   :  { %196 = vmatmul.msk.f32.vlgmr.msra.gmra.mxu1 %vm23_vm0, %v51_v6 }
 0x184   :  { %v89_v13 = vpop.f32.mrf.mxu1 }
 0x185   :  { %v128_v14 = vsel %vm127_vm1, %v89_v13, -inf  ;;  %v93_v15 = vsel %vm92_vm2, %v89_v13, -inf }
 0x186   :  { %129 = vmax.xlane.f32.xlu1 %v128_v14  ;;  %94 = vmax.xlane.f32.xlu2 %v93_v15 }
 0x1f9   :  { %v130_v16 = vpop.xlane.xlu1 %129  ;;  %v95_v17 = vpop.xlane.xlu2 %94 }
 0x1fa   :  { %v131_v18 = vsub.f32 %v89_v13, %v130_v16  ;;  %v96_v19 = vsub.f32 %v89_v13, %v95_v17 }
 0x1fc   :  { %v132_v20 = vmul.f32 1.442695, %v131_v18  ;;  %v97_v21 = vmul.f32 1.442695, %v96_v19 }
 0x1fe   :  { %203 = vpow2.f32 %v132_v20 }
 0x1ff   :  { %205 = vpow2.f32 %v97_v21 }
 0x204   :  { %v204_v22 = vpop.eup %203 }
 0x205   :  { %v206_v23 = vpop.eup %205  ;;  %135 = vrot.lane.b32.xlu1 %v204_v22, %s237_s21 }
 0x206   :  { %v99_v24 = vsel %vm92_vm2, %v206_v23, 0.0 }
 0x207   :  { %100 = vadd.xlane.f32.xlu0 %v99_v24 }
 0x277   :  { %v136_v25 = vpop.permute.xlu1 %135 }
 0x278   :  { %v138_v26 = vsel %vm92_vm2, %v136_v25, 0.0 }
 0x279   :  { %139 = vadd.xlane.f32.xlu2 %v138_v26 }
 0x27a   :  { %v101_v27 = vpop.xlane.xlu0 %100 }
 0x27b   :  { %207 = vrcp.f32 %v101_v27 }
 0x281   :  { %v208_v28 = vpop.eup %207 }
 0x282   :  { %v103_v29 = vmul.f32 %v208_v28, %v206_v23 }
 0x284   :  { %197 = vmatmul.msk.f32.vlgmr.msrb.gmra.mxu2 %vm23_vm0, %v103_v29 }
 0x2ec   :  { %v140_v30 = vpop.xlane.xlu2 %139 }
 0x2ed   :  { %209 = vrcp.f32 %v140_v30 }
 0x2f3   :  { %v210_v31 = vpop.eup %209 }
 0x2f4   :  { %v142_v32 = vmul.f32 %v210_v31, %v204_v22 }
 0x2f6   :  { %144 = vrot.lane.b32.xlu2 %v142_v32, %s237_s21 }
 0x307   :  { %v124_v36 = vpop.f32.mrf.mxu2 }
 0x350   :  { %v145_v33 = vpop.permute.xlu2 %144 }
 0x351   :  { %198 = vmatmul.msk.f32.vlgmr.msra.gmra.mxu3 %vm23_vm0, %v145_v33 }
 0x3d4   :  { %v165_v34 = vpop.f32.mrf.mxu3 }
 0x3d5   :  { %v169_v35 = vrot.slane %v165_v34, 6 }
 0x3d7   :  { %v172_v37 = vsel %vm171_vm3, %v124_v36, %v169_v35 }
 0x3d8   :  { %174 = vst.msk [vmem:[#allocation2] sm:$0xf] %vm173_vm4, %v172_v37 }
 0x3d9   :  { %185 = dma.vmem_to_hbm [thread:$0]  %s181_s2, 64, %s183_s24, [#allocation3]  }
 0x3da   :  { %235 = dma.done.wait [#allocation3], 64  }
 0x3db   :  { %236 = vsyncadd [#allocation3], 4294967232 }
 0x3dc   :  { %190 = vsyncpa [#allocation3], 1 }

</bundles_post_ra>
